<compile_context>
chip_gen: v7x
topology: tpu7x:2x2x1
jax: 0.10.0
libtpu: 0.0.40
codegen_flags: <defaults>
</compile_context>

<pallas_src>
import functools
import math

import jax
import jax.numpy as jnp
from jax.experimental import pallas as pl
from jax.experimental.pallas import tpu as pltpu


def _round_up(x: int, m: int) -> int:
    return ((x + m - 1) // m) * m


def _round_down(x: int, m: int) -> int:
    return (x // m) * m


def _supports_buffered() -> bool:
    try:
        pl.BlockSpec((8, 128), lambda i: (0, 0), pipeline_mode=pl.Buffered(1))
        return True
    except Exception:
        return False


_BUFFERED_OK = _supports_buffered()


def _resident_spec(block_shape, index_map, resident: bool):
    """Single-buffer blocks whose index never changes across the grid."""
    if resident and _BUFFERED_OK:
        return pl.BlockSpec(block_shape, index_map, pipeline_mode=pl.Buffered(1))
    return pl.BlockSpec(block_shape, index_map)


def _vmem_capacity_bytes():
    try:
        return int(pltpu.get_tpu_info().vmem_capacity_bytes)
    except Exception:
        return None


def _concat_proj_kernel(*refs, n_inputs: int):
    # refs = (x_0..x_{n-1}, w_0..w_{n-1}, bias, out)
    x_refs = refs[:n_inputs]
    w_refs = refs[n_inputs:2 * n_inputs]
    b_ref = refs[2 * n_inputs]
    o_ref = refs[2 * n_inputs + 1]

    # Fused "concat -> Linear" without materializing the concat: one MXU dot per
    # input against its resident weight chunk, accumulated in f32.
    acc = jnp.dot(x_refs[0][...], w_refs[0][...], preferred_element_type=jnp.float32)
    for x_ref, w_ref in zip(x_refs[1:], w_refs[1:]):
        acc = acc + jnp.dot(x_ref[...], w_ref[...], preferred_element_type=jnp.float32)
    acc = acc + b_ref[...].astype(jnp.float32)  # bias broadcast over rows
    # Dropout(p=0.0) and Identity activation are no-ops.
    o_ref[...] = acc.astype(o_ref.dtype)


def concat_projection_combination(xs, weight, bias=None, *, max_tile_m: int = 2048):
    """Pallas implementation of ConcatProjectionCombination.forward.

    :param xs: sequence of arrays, each of shape (*batch_dims, K_i)
    :param weight: shape (sum(K_i), N) -- transposed w.r.t. torch.nn.Linear.weight
    :param bias: shape (N,) or None
    :returns: shape (*batch_dims, N)
    """
    n_inputs = len(xs)
    if n_inputs == 0:
        raise ValueError("Cannot provide empty input list")

    k_dims = [int(x.shape[-1]) for x in xs]
    k_total = sum(k_dims)
    n_out = int(weight.shape[1])
    assert int(weight.shape[0]) == k_total, "weight rows must equal sum of input dims"

    batch_dims = xs[0].shape[:-1]
    m = int(math.prod(batch_dims)) if batch_dims else 1
    xs2d = [x.reshape(m, k) for x, k in zip(xs, k_dims)]
    out_dtype = xs2d[0].dtype
    x_isz = xs2d[0].dtype.itemsize
    w_isz = weight.dtype.itemsize
    o_isz = x_isz

    if bias is None:
        bias = jnp.zeros((n_out,), dtype=weight.dtype)
    bias2d = bias.reshape(1, n_out)
    b_isz = bias2d.dtype.itemsize

    # Split the weight once (tiny, one-time) into per-input chunks -> no in-kernel
    # concat / lane relayout, and all kernel blocks are clean full-extent slabs.
    w_chunks = []
    off = 0
    for k in k_dims:
        w_chunks.append(weight[off:off + k, :])
        off += k

    # ---- generation-aware VMEM budget -----------------------------------------
    MiB = 1024 * 1024
    cap = _vmem_capacity_bytes()
    if cap is not None and cap >= 96 * MiB:       # v5e / v6e: 128 MiB physical
        vmem_budget, vmem_limit, two_tc = 48 * MiB, 64 * MiB, False
    else:                                          # v7x (64 MiB / TC) or unknown
        vmem_budget, vmem_limit = 30 * MiB, 48 * MiB
        two_tc = cap is not None                   # v7x proxy; unknown -> conservative

    # ---- N tiling only when the weight cannot sit resident --------------------
    resident_w_bytes = k_total * n_out * w_isz * 2   # assume double-buffered (safe)
    if resident_w_bytes <= vmem_budget // 2 or n_out % 128 != 0:
        tile_n = n_out
    else:
        tile_n = max(128, _round_down((vmem_budget // 2) // (2 * k_total * w_isz), 128))
        tile_n = min(tile_n, n_out)
    grid_n = pl.cdiv(n_out, tile_n)
    # TODO(synk): add a K grid axis (f32 accumulator scratch) for weights whose
    #             (K, tile_n) slab still exceeds VMEM; not needed at typical sizes.

    # ---- adaptive row tile (dtype-aware sublane, internal temporaries counted) -
    sublane = {4: 8, 2: 16, 1: 32}.get(x_isz, 8)
    resident_bytes = (k_total * tile_n * w_isz + tile_n * b_isz) * 2  # conservative x2
    # double-buffered x tiles + double-buffered out tile + f32 accumulator temp
    bytes_per_row = 2 * k_total * x_isz + 2 * tile_n * o_isz + 4 * tile_n
    tile_cap = max(sublane, (vmem_budget - resident_bytes) // max(bytes_per_row, 1))
    tile_m = max(sublane, _round_down(min(max_tile_m, tile_cap), sublane))
    tile_m = min(tile_m, _round_up(m, sublane))     # single step for small batches
    grid_m = pl.cdiv(m, tile_m)

    # Megacore balance: only worth it on 2-TC parts (v7x) and small odd grids.
    if (two_tc and grid_n == 1 and 1 < grid_m <= 8 and grid_m % 2 == 1
            and tile_m >= 2 * sublane and (tile_m // 2) % sublane == 0):
        tile_m //= 2
        grid_m = pl.cdiv(m, tile_m)

    resident = grid_n == 1
    in_specs = (
        # x_i tiles: tile over rows, full feature dim (== array extent, so legal
        # even when K_i is not a 128-multiple); last row tile may be partial.
        [pl.BlockSpec((tile_m, k), lambda j, i: (i, 0)) for k in k_dims]
        # per-input weight chunks + bias: resident (constant index) when grid_n==1
        + [_resident_spec((k, tile_n), lambda j, i: (0, j), resident) for k in k_dims]
        + [_resident_spec((1, tile_n), lambda j, i: (0, j), resident)]
    )
    # Unpadded output block: full-extent last dim, masked store for partial tiles;
    # no padded-N writeback and no post-kernel slice pass.
    out_spec = pl.BlockSpec((tile_m, tile_n), lambda j, i: (i, j))

    cost = pl.CostEstimate(
        flops=2 * m * k_total * n_out,
        transcendentals=0,
        bytes_accessed=(grid_n * m * k_total * x_isz          # x re-read per N tile
                        + k_total * n_out * w_isz
                        + n_out * b_isz
                        + m * n_out * o_isz),
    )

    kernel = functools.partial(_concat_proj_kernel, n_inputs=n_inputs)

    out2d = pl.pallas_call(
        kernel,
        out_shape=jax.ShapeDtypeStruct((m, n_out), out_dtype),
        grid_spec=pltpu.PrefetchScalarGridSpec(
            num_scalar_prefetch=0,
            grid=(grid_n, grid_m),        # N outer (weight fetched once per N tile),
            in_specs=in_specs,            # M inner (streams activation rows)
            out_specs=out_spec,
        ),
        compiler_params=pltpu.CompilerParams(
            dimension_semantics=("parallel", "parallel"),
            vmem_limit_bytes=vmem_limit,
        ),
        cost_estimate=cost,
    )(*xs2d, *w_chunks, bias2d)

    return out2d.reshape(*batch_dims, n_out)


def reference(xs, weight, bias):
    batch_dims = xs[0].shape[:-1]
    x = jnp.concatenate([x.reshape(-1, x.shape[-1]) for x in xs], axis=-1)
    y = x @ weight + bias
    return y.reshape(*batch_dims, weight.shape[1])


if __name__ == "__main__":
    key = jax.random.PRNGKey(0)

    # Module config: input_dims = (32, 16, 48); output_dim defaults to input_dims[0] = 32.
    input_dims = (32, 16, 48)
    output_dim = input_dims[0]
    batch_dims = (2, 4)  # small (*batch_dims, K_i) inputs, flattened to 8 rows

    k_xs, k_w, k_b = jax.random.split(key, 3)
    x_keys = jax.random.split(k_xs, len(input_dims))
    xs = [
        jax.random.normal(kk, (*batch_dims, d), dtype=jnp.float32)
        for kk, d in zip(x_keys, input_dims)
    ]

    fan_in = sum(input_dims)
    bound = 1.0 / (fan_in**0.5)
    # Weight stored as (in_features, out_features) = torch.nn.Linear.weight.T
    weight = jax.random.uniform(
        k_w, (fan_in, output_dim), minval=-bound, maxval=bound, dtype=jnp.float32
    )
    bias = jax.random.uniform(
        k_b, (output_dim,), minval=-bound, maxval=bound, dtype=jnp.float32
    )

    out = concat_projection_combination(xs, weight, bias)
    out = jax.block_until_ready(out)

    ref = reference(xs, weight, bias)
    assert out.shape == (*batch_dims, output_dim)
    assert jnp.allclose(out, ref, atol=1e-5, rtol=1e-5)

    print("KERNEL_OK")
</pallas_src>

<mosaic_0001>
module attributes {stable_mosaic.version = 11 : i64} {
  func.func @_concat_proj_kernel(%arg0: i32, %arg1: i32, %arg2: memref<8x32xf32, #tpu.memory_space<vmem>>, %arg3: memref<8x16xf32, #tpu.memory_space<vmem>>, %arg4: memref<8x48xf32, #tpu.memory_space<vmem>>, %arg5: memref<32x32xf32, #tpu.memory_space<vmem>>, %arg6: memref<16x32xf32, #tpu.memory_space<vmem>>, %arg7: memref<48x32xf32, #tpu.memory_space<vmem>>, %arg8: memref<1x32xf32, #tpu.memory_space<vmem>>, %arg9: memref<8x32xf32, #tpu.memory_space<vmem>>) attributes {dimension_semantics = [#tpu.dimension_semantics<parallel>, #tpu.dimension_semantics<parallel>], iteration_bounds = array<i64: 1, 1>, scalar_prefetch = 0 : i64, scratch_operands = 0 : i64, tpu.core_type = #tpu.core_type<tc>, window_params = [{transform_indices = @transform_0, window_bounds = array<i64: 8, 32>}, {transform_indices = @transform_1, window_bounds = array<i64: 8, 16>}, {transform_indices = @transform_2, window_bounds = array<i64: 8, 48>}, {pipeline_mode = #tpu.pipeline_mode<synchronous>, transform_indices = @transform_3, window_bounds = array<i64: 32, 32>}, {pipeline_mode = #tpu.pipeline_mode<synchronous>, transform_indices = @transform_4, window_bounds = array<i64: 16, 32>}, {pipeline_mode = #tpu.pipeline_mode<synchronous>, transform_indices = @transform_5, window_bounds = array<i64: 48, 32>}, {pipeline_mode = #tpu.pipeline_mode<synchronous>, transform_indices = @transform_6, window_bounds = array<i64: 1, 32>}, {transform_indices = @transform_7, window_bounds = array<i64: 8, 32>}]} {
    %c0 = arith.constant 0 : index
    %c0_0 = arith.constant 0 : index
    %0 = vector.load %arg2[%c0, %c0_0] : memref<8x32xf32, #tpu.memory_space<vmem>>, vector<8x32xf32>
    %c0_1 = arith.constant 0 : index
    %c0_2 = arith.constant 0 : index
    %1 = vector.load %arg5[%c0_1, %c0_2] : memref<32x32xf32, #tpu.memory_space<vmem>>, vector<32x32xf32>
    %cst = arith.constant dense<0.000000e+00> : vector<8x32xf32>
    %2 = tpu.matmul %0, %1, %cst {dimension_numbers = #tpu.dot_dimension_numbers<[1], [0], [0], [1], [0, 0, 1, 1], [], []>} : vector<8x32xf32>, vector<32x32xf32>, vector<8x32xf32> -> vector<8x32xf32>
    %c0_3 = arith.constant 0 : index
    %c0_4 = arith.constant 0 : index
    %3 = vector.load %arg3[%c0_3, %c0_4] : memref<8x16xf32, #tpu.memory_space<vmem>>, vector<8x16xf32>
    %c0_5 = arith.constant 0 : index
    %c0_6 = arith.constant 0 : index
    %4 = vector.load %arg6[%c0_5, %c0_6] : memref<16x32xf32, #tpu.memory_space<vmem>>, vector<16x32xf32>
    %cst_7 = arith.constant dense<0.000000e+00> : vector<8x32xf32>
    %5 = tpu.matmul %3, %4, %cst_7 {dimension_numbers = #tpu.dot_dimension_numbers<[1], [0], [0], [1], [0, 0, 1, 1], [], []>} : vector<8x16xf32>, vector<16x32xf32>, vector<8x32xf32> -> vector<8x32xf32>
    %6 = arith.addf %2, %5 : vector<8x32xf32>
    %c0_8 = arith.constant 0 : index
    %c0_9 = arith.constant 0 : index
    %7 = vector.load %arg4[%c0_8, %c0_9] : memref<8x48xf32, #tpu.memory_space<vmem>>, vector<8x48xf32>
    %c0_10 = arith.constant 0 : index
    %c0_11 = arith.constant 0 : index
    %8 = vector.load %arg7[%c0_10, %c0_11] : memref<48x32xf32, #tpu.memory_space<vmem>>, vector<48x32xf32>
    %cst_12 = arith.constant dense<0.000000e+00> : vector<8x32xf32>
    %9 = tpu.matmul %7, %8, %cst_12 {dimension_numbers = #tpu.dot_dimension_numbers<[1], [0], [0], [1], [0, 0, 1, 1], [], []>} : vector<8x48xf32>, vector<48x32xf32>, vector<8x32xf32> -> vector<8x32xf32>
    %10 = arith.addf %6, %9 : vector<8x32xf32>
    %c0_13 = arith.constant 0 : index
    %c0_14 = arith.constant 0 : index
    %11 = vector.load %arg8[%c0_13, %c0_14] : memref<1x32xf32, #tpu.memory_space<vmem>>, vector<1x32xf32>
    %12 = vector.broadcast %11 : vector<1x32xf32> to vector<8x32xf32>
    %13 = arith.addf %10, %12 : vector<8x32xf32>
    %c0_15 = arith.constant 0 : index
    %c0_16 = arith.constant 0 : index
    %14 = vector.load %arg9[%c0_15, %c0_16] : memref<8x32xf32, #tpu.memory_space<vmem>>, vector<8x32xf32>
    tpu.vector_store %arg9[%c0_15, %c0_16], %13 {strides = array<i32>} : memref<8x32xf32, #tpu.memory_space<vmem>>, vector<8x32xf32>,
    return
  }
  func.func @transform_0(%arg0: i32, %arg1: i32) -> (i32, i32) {
    %c0_i32 = arith.constant 0 : i32
    %c0_i32_0 = arith.constant 0 : i32
    return %arg1, %c0_i32 : i32, i32
  }
  func.func @transform_1(%arg0: i32, %arg1: i32) -> (i32, i32) {
    %c0_i32 = arith.constant 0 : i32
    %c0_i32_0 = arith.constant 0 : i32
    return %arg1, %c0_i32 : i32, i32
  }
  func.func @transform_2(%arg0: i32, %arg1: i32) -> (i32, i32) {
    %c0_i32 = arith.constant 0 : i32
    %c0_i32_0 = arith.constant 0 : i32
    return %arg1, %c0_i32 : i32, i32
  }
  func.func @transform_3(%arg0: i32, %arg1: i32) -> (i32, i32) {
    %c0_i32 = arith.constant 0 : i32
    %c0_i32_0 = arith.constant 0 : i32
    return %c0_i32, %arg0 : i32, i32
  }
  func.func @transform_4(%arg0: i32, %arg1: i32) -> (i32, i32) {
    %c0_i32 = arith.constant 0 : i32
    %c0_i32_0 = arith.constant 0 : i32
    return %c0_i32, %arg0 : i32, i32
  }
  func.func @transform_5(%arg0: i32, %arg1: i32) -> (i32, i32) {
    %c0_i32 = arith.constant 0 : i32
    %c0_i32_0 = arith.constant 0 : i32
    return %c0_i32, %arg0 : i32, i32
  }
  func.func @transform_6(%arg0: i32, %arg1: i32) -> (i32, i32) {
    %c0_i32 = arith.constant 0 : i32
    %c0_i32_0 = arith.constant 0 : i32
    return %c0_i32, %arg0 : i32, i32
  }
  func.func @transform_7(%arg0: i32, %arg1: i32) -> (i32, i32) {
    %c0_i32 = arith.constant 0 : i32
    return %arg1, %arg0 : i32, i32
  }
}

</mosaic_0001>

<bundles_post_ra>
// kernel: tpu_custom_call.1
= control target key start
LH: loop header
LB: loop body
LE: loop exit
PB: predicated region body
PF: predicated region fallthrough
CT: control target
= control target key end

     0   :  { %v386_v3 = vmov 0.0|0.0   ;;  %vm387_vm0 = vmmov 0   ;;  %v388_v8 = vmov 0.0   ;;  %vm35_vm1 = vcmask 130048   ;;  %s495_s0 = inlined_call_operand.vmem [shape: f32[8,32], index: 0, kind: input, shape index: {}]   ;;  %s496_s1 = inlined_call_operand.vmem [shape: f32[8,16], index: 1, kind: input, shape index: {}]   ;;  %s497_s2 = inlined_call_operand.vmem [shape: f32[8,48], index: 2, kind: input, shape index: {}]   ;;  %s498_s3 = inlined_call_operand.vmem [shape: f32[32,32], index: 3, kind: input, shape index: {}]   ;;  %s499_s4 = inlined_call_operand.vmem [shape: f32[16,32], index: 4, kind: input, shape index: {}]   ;;  %s500_s5 = inlined_call_operand.vmem [shape: f32[48,32], index: 5, kind: input, shape index: {}]   ;;  %s501_s6 = inlined_call_operand.vmem [shape: f32[1,32], index: 6, kind: input, shape index: {}]   ;;  %s502_s7 = inlined_call_operand.hbm [shape: f32[8,32], index: 7, kind: output, shape index: {}]  }
   0x1   :  { %v33_v0 = vld [vmem:[%s499_s4] sm:$0xff]  ;;  %v34_v1 = vld [vmem:[%s499_s4 + $0x8] sm:$0xff]  ;;  %340 = vmatprep.subr.bf16.mxu1 %v386_v3  ;;  %349 = vmatprep.subr.bf16.mxu0 %v386_v3  ;;  %v186_v10 = vld [vmem:[%s500_s5 + $0x10] sm:$0xff] }
   0x2   :  { %v184_v2 = vld [vmem:[%s500_s5] sm:$0xff]  ;;  %v341_v4 = vpack.c.bf16 %v34_v1, %v33_v0  ;;  %v185_v5 = vld [vmem:[%s500_s5 + $0x8] sm:$0xff]  ;;  %311 = vmatprep.mubr.msk.f32.mxu1 %vm387_vm0, %v388_v8  ;;  %v187_v11 = vld [vmem:[%s500_s5 + $0x18] sm:$0xff]  ;;  %337 = vmatprep.mubr.msk.f32.mxu0 %vm387_vm0, %v388_v8 }
   0x3   :  { %v28_v6 = vld [vmem:[%s498_s3] sm:$0xff]  ;;  %v350_v7 = vpack.c.bf16 %v185_v5, %v184_v2  ;;  %v29_v9 = vld [vmem:[%s498_s3 + $0x8] sm:$0xff]  ;;  %v353_v14 = vpack.c.bf16 %v187_v11, %v186_v10  ;;  %v30_v15 = vld [vmem:[%s498_s3 + $0x10] sm:$0xff] }
   0x4   :  { %342 = vmatpush3.bf16.msra.mxu1 %v341_v4  ;;  %v32_v12 = vld [vmem:[%s496_s1] sm:$0xff]  ;;  %v344_v13 = vpack.c.bf16 %v29_v9, %v28_v6  ;;  %v31_v16 = vld [vmem:[%s498_s3 + $0x18] sm:$0xff]  ;;  %v189_v18 = vld [vmem:[%s500_s5 + $0x28] sm:$0xff] }
   0x5   :  { %351 = vmatpush3.bf16.msra.mxu0 %v350_v7  ;;  %343 = vmatprep.subr.bf16.mxu1 %v386_v3  ;;  %v188_v17 = vld [vmem:[%s500_s5 + $0x20] sm:$0xff] }
   0x6   :  { %352 = vmatprep.subr.bf16.mxu0 %v386_v3 }
   0x7   :  { %12 = vsyncpa [#allocation3], 0  ;;  %312 = vmatmul.mubr.msk.f32.vlgmr.msra.gmra.mrb[0].mxu1 %vm35_vm1, %v32_v12  ;;  %v347_v19 = vpack.c.bf16 %v31_v16, %v30_v15  ;;  %v356_v20 = vpack.c.bf16 %v189_v18, %v188_v17  ;;  %v27_v21 = vld [vmem:[%s495_s0] sm:$0xff]  ;;  %vm109_vm2 = vcmask 261120   ;;  %vm190_vm3 = vcmask 392192   ;;  %s389_s0 = smov [#allocation2]  }
   0x8   :  { %345 = vmatpush3.bf16.msra.mxu1 %v344_v13  ;;  %322 = vmatprep.mubr.msk.f32.mxu1 %vm387_vm0, %v388_v8  ;;  %v183_v22 = vld [vmem:[%s497_s2] sm:$0xff]  ;;  %s280_s29 = sshll.u32 %s389_s0, 4  ;;  %s281_s29 = int_to_ptr.vmem [resolvable:$true] %s280_s29 }
   0x9   :  { %354 = vmatpush3.bf16.msra.mxu0 %v353_v14  ;;  %346 = vmatprep.subr.bf16.mxu1 %v386_v3  ;;  %v291_v29 = vld [vmem:[%s501_s6] ss:$0 sm:$0xff]  ;;  %s362_s2 = scalar_lea.vmem %s281_s29, 128  ;;  %p367_p1 = scmp.lt.s32.totalorder %s281_s29, %s281_s29 }
   0xa   :  { %355 = vmatprep.subr.bf16.mxu0 %v386_v3  ;;  %p363_p0 = scmp.ne.s32.totalorder %s281_s29, %s362_s2  ;;  %p368_p2 = scmp.lt.s32.totalorder %s362_s2, %s362_s2 }
   0xc   :  { %348 = vmatpush3.bf16.msra.mxu1 %v347_v19  ;;  %p369_p3 = por %p368_p2, %p367_p1 }
   0xd   :  { %357 = vmatpush3.bf16.msra.mxu0 %v356_v20 }
   0xe   :  { %p370_p4 = pnand %p369_p3, %p363_p0 }
   0xf   :  { %323 = vmatmul.mubr.msk.f32.vlgmr.msra.gmra.mrb[2].mxu1 %vm109_vm2, %v27_v21 }
  0x10   :  { %338 = vmatmul.mubr.msk.f32.vlgmr.msra.gmra.mrb[0].mxu0 %vm190_vm3, %v183_v22 }
  0xda   :  { %v105_v23 = vpop.f32.mrb[0].mxu1 }
  0xdb   :  { %v313_v24 = vpop.f32.mrb[1].mxu1 }
  0xe2   :  { %v179_v25 = vpop.f32.mrb[2].mxu1 }
  0xe3   :  { %v180_v26 = vadd.f32 %v179_v25, %v105_v23  ;;  %v324_v27 = vpop.f32.mrb[3].mxu1  ;;  %v260_v28 = vpop.f32.mrb[0].mxu0 }
  0xe4   :  { %v339_v30 = vpop.f32.mrb[1].mxu0 }
  0xe5   :  { %v264_v31 = vadd.f32 %v260_v28, %v180_v26 }
  0xe7   :  { %v272_v32 = vadd.f32 %v291_v29, %v264_v31 }
  0xe9   :  { %273 = vst.msk [vmem:[#allocation2] sm:$0xff] %vm109_vm2, %v272_v32 }
  0xea   :  { %373 = shalt.err (!%p370_p4)
}
  0xeb   :  { %s374_s9 = scalar_lea.hbm %s502_s7, 128 }
  0xec   :  { %p375_p5 = scmp.ne.s32.totalorder %s502_s7, %s374_s9  ;;  %p378_p6 = scmp.lt.u32.totalorder %s374_s9, %s502_s7 }
  0xee   :  { %p380_p7 = pnand %p378_p6, %p375_p5 }
  0xf0   :  { %383 = shalt.err (!%p380_p7)
}
  0xf1   :  { %283 = dma.vmem_to_hbm [thread:$0]  %s281_s29, 128, %s502_s7, [#allocation3]  }
  0xf2   :  { %384 = dma.done.wait [#allocation3], 128  }
  0xf3   :  { %385 = vsyncadd [#allocation3], 4294967168 }
  0xf4   :  { %287 = vsyncpa [#allocation3], 1 }

</bundles_post_ra>
